<compile_context>
chip_gen: v7x
topology: tpu7x:2x2x1
jax: 0.10.0
libtpu: 0.0.40
codegen_flags: <defaults>
</compile_context>

<pallas_src>
import math
import jax
import jax.numpy as jnp
from jax.experimental import pallas as pl
from jax.experimental.pallas import tpu as pltpu

HID_DIM = 32
N_HEADS = 4
HEAD_DIM = HID_DIM // N_HEADS
SEQ = 8
BATCH = 2


def _mha_kernel(x_ref, wqkv_ref, wo_ref, out_ref, attn_ref):
    # x_ref:    (3*B*NH, L, H+1)  q|k|v streams stacked on the leading axis, each
    #           row replicated once per head (n = b*NH + h), trailing ones column
    #           for the affine bias trick.
    # wqkv_ref: (3*B*NH, H+1, HD+1)  matching per-(stream, head) weight slices,
    #           bias folded in as the last contraction row; the extra output
    #           column is 0 for Q/K (contributes nothing to the energy) and 1
    #           for V (gives ctx a ones column that routes the fc bias).
    # wo_ref:   (B*NH, HD+1, H)  per-head slices of fc.weight^T with fc.bias/NH
    #           as the last row (picked up by ctx's ones column).
    n_pairs = attn_ref.shape[0]                      # B * N_HEADS
    bsz = out_ref.shape[0]

    x = x_ref[...]
    w = wqkv_ref[...]

    # ONE batched MXU einsum for all of Q/K/V x batch x head; no in-kernel
    # head slicing, reshapes or stacks (review #1), biases included (review #4).
    qkv = jnp.einsum('nld,nde->nle', x, w, preferred_element_type=jnp.float32)

    q = qkv[0:n_pairs]                               # leading-axis slices: free
    k = qkv[n_pairs:2 * n_pairs]
    v = qkv[2 * n_pairs:3 * n_pairs]                 # (N, L, HD+1), last col == 1

    inv_scale = jnp.float32(1.0 / math.sqrt(HEAD_DIM))
    # The zero extra column of q/k contributes 0 to the contraction.
    energy = jnp.einsum('nqd,nkd->nqk', q, k,
                        preferred_element_type=jnp.float32) * inv_scale   # (N, L, L)

    # Numerically-stable softmax; EUP approx reciprocal + one Newton-Raphson
    # step keeps the divide off the VPU critical path (review #6).
    m = jnp.max(energy, axis=-1, keepdims=True)
    e = jnp.exp(energy - m)
    denom = jnp.sum(e, axis=-1, keepdims=True)
    r = pl.reciprocal(denom, approx=True)
    r = r * (2.0 - denom * r)                        # one Newton step: rel err ~1e-7
    attn = e * r
    # TODO(synk): attention dropout is identity (eval mode); mask=None path only.

    attn_ref[...] = attn                             # single contiguous store

    # ctx keeps a trailing ones column (softmax rows sum to 1), which the last
    # row of wo_ref turns into the fc bias.
    ctx = jnp.einsum('nqk,nkd->nqd', attn, v,
                     preferred_element_type=jnp.float32)                  # (N, L, HD+1)

    # Head re-pack folded into the output projection (review #2): per-head
    # partial matmuls, then a tile-preserving leading-dim reshape + VPU sum
    # over heads (no XLU lane-concats).
    partial = jnp.einsum('nld,ndo->nlo', ctx, wo_ref[...],
                         preferred_element_type=jnp.float32)              # (N, L, H)
    out = partial.reshape(bsz, n_pairs // bsz,
                          partial.shape[1], partial.shape[2]).sum(axis=1)  # (B, L, H)
    out_ref[...] = out.astype(out_ref.dtype)


def pack_params(params, batch):
    """One-time host-side weight packing, hoisted out of the per-call path
    (review #5).  No block-diagonal zero blocks: only the useful per-head
    slices plus one bias row / extra column for the affine trick are shipped."""
    wq, bq, wk, bk, wv, bv, wo, bo = params
    H, NH, HD = HID_DIM, N_HEADS, HEAD_DIM

    def per_head(wmat, bvec, extra_col_bias):
        wt = wmat.T                                              # (H, H)
        blocks = []
        for h in range(NH):
            top = jnp.concatenate(
                [wt[:, h * HD:(h + 1) * HD], jnp.zeros((H, 1), jnp.float32)], axis=1)
            bot = jnp.concatenate(
                [bvec[h * HD:(h + 1) * HD].reshape(1, HD),
                 jnp.full((1, 1), extra_col_bias, jnp.float32)], axis=1)
            blocks.append(jnp.concatenate([top, bot], axis=0))   # (H+1, HD+1)
        return jnp.stack(blocks, axis=0)                         # (NH, H+1, HD+1)

    wq_h = per_head(wq, bq, 0.0)
    wk_h = per_head(wk, bk, 0.0)
    wv_h = per_head(wv, bv, 1.0)      # ones column -> ctx carries a 1 per row
    # Replicate per batch element (n = b*NH + h, head pattern repeats per b) and
    # stack the q|k|v streams on the leading axis.  NOTE: at real model sizes
    # don't replicate weights per batch — switch to a flash-style tiled grid.
    w_qkv = jnp.concatenate(
        [jnp.tile(s, (batch, 1, 1)) for s in (wq_h, wk_h, wv_h)], axis=0)

    woT = wo.T
    wo_blocks = [jnp.concatenate([woT[h * HD:(h + 1) * HD, :],
                                  (bo / NH).reshape(1, H)], axis=0)
                 for h in range(NH)]
    wo_h = jnp.tile(jnp.stack(wo_blocks, axis=0), (batch, 1, 1))  # (B*NH, HD+1, H)
    return w_qkv, wo_h


def multi_head_attention(query, key, value, packed_w):
    B, L, H = query.shape
    NH = N_HEADS
    N = B * NH
    w_qkv, wo_h = packed_w

    # Per-call input packing: append the affine ones column and replicate each
    # batch row once per head so the kernel needs zero in-kernel head slicing.
    # Pure layout plumbing, free under XLA.
    ones = jnp.ones((B, L, 1), query.dtype)

    def rep(x):
        xa = jnp.concatenate([x, ones], axis=-1)     # (B, L, H+1)
        return jnp.repeat(xa, NH, axis=0)            # (B*NH, L, H+1), n = b*NH + h

    x_cat = jnp.concatenate([rep(query), rep(key), rep(value)], axis=0)  # (3N, L, H+1)

    vmem = pl.BlockSpec(memory_space=pltpu.MemorySpace.VMEM)

    # Gridless single invocation: at B=2, L=8 the kernel is fixed-overhead
    # bound, so no pipelining/tiling machinery (~0.35 us/step saved).
    # Scaling plan (review #7/#8):
    #  * v7x (2 TCs): once B*NH or L grows, use grid=(B*NH,) with
    #    compiler_params=pltpu.CompilerParams(dimension_semantics=("parallel",))
    #    to shard across TensorCores (pure overhead on single-TC v5e/v6e).
    #  * v7x has 64 MiB VMEM (~32 MiB scoped): for large L never materialize
    #    the full LxL attention — switch to a flash-style grid over
    #    (batch*head, q-tile, kv-tile) with 128-aligned tiles, and stop
    #    replicating weights per batch element.
    out, attn = pl.pallas_call(
        _mha_kernel,
        out_shape=(
            jax.ShapeDtypeStruct((B, L, H), query.dtype),
            jax.ShapeDtypeStruct((N, L, L), jnp.float32),
        ),
        in_specs=[vmem, vmem, vmem],
        out_specs=(vmem, vmem),
    )(x_cat, w_qkv, wo_h)

    attention = attn.reshape(B, NH, L, L)
    # torch returns (x, attention.squeeze())
    return out, jnp.squeeze(attention)


def _reference(query, key, value, params):
    wq, bq, wk, bk, wv, bv, wo, bo = params
    B, L, H = query.shape
    Q = query @ wq.T + bq
    K = key @ wk.T + bk
    V = value @ wv.T + bv
    Q = Q.reshape(B, L, N_HEADS, HEAD_DIM).transpose(0, 2, 1, 3)
    K = K.reshape(B, L, N_HEADS, HEAD_DIM).transpose(0, 2, 1, 3)
    V = V.reshape(B, L, N_HEADS, HEAD_DIM).transpose(0, 2, 1, 3)
    energy = jnp.einsum("bhqd,bhkd->bhqk", Q, K) / math.sqrt(HEAD_DIM)
    attn = jax.nn.softmax(energy, axis=-1)
    x = jnp.einsum("bhqk,bhkd->bhqd", attn, V)
    x = x.transpose(0, 2, 1, 3).reshape(B, L, H)
    x = x @ wo.T + bo
    return x, jnp.squeeze(attn)


def _init_params(key):
    ks = jax.random.split(key, 8)
    bound = 1.0 / math.sqrt(HID_DIM)

    def u(k, shape):
        return jax.random.uniform(k, shape, jnp.float32, -bound, bound)

    wq, bq = u(ks[0], (HID_DIM, HID_DIM)), u(ks[1], (HID_DIM,))
    wk, bk = u(ks[2], (HID_DIM, HID_DIM)), u(ks[3], (HID_DIM,))
    wv, bv = u(ks[4], (HID_DIM, HID_DIM)), u(ks[5], (HID_DIM,))
    wo, bo = u(ks[6], (HID_DIM, HID_DIM)), u(ks[7], (HID_DIM,))
    return (wq, bq, wk, bk, wv, bv, wo, bo)


if __name__ == "__main__":
    root = jax.random.PRNGKey(0)
    kp, kq, kk, kv = jax.random.split(root, 4)
    params = _init_params(kp)
    query = jax.random.normal(kq, (BATCH, SEQ, HID_DIM), jnp.float32)
    key_in = jax.random.normal(kk, (BATCH, SEQ, HID_DIM), jnp.float32)
    value = jax.random.normal(kv, (BATCH, SEQ, HID_DIM), jnp.float32)

    packed = pack_params(params, BATCH)              # hoisted one-time packing

    out, attn = multi_head_attention(query, key_in, value, packed)
    jax.block_until_ready(out)
    jax.block_until_ready(attn)

    ref_out, ref_attn = _reference(query, key_in, value, params)
    assert jnp.allclose(out, ref_out, atol=1e-4, rtol=1e-4)
    assert jnp.allclose(attn, ref_attn, atol=1e-5, rtol=1e-4)
    print("KERNEL_OK")
</pallas_src>

<mosaic_0001>
module attributes {stable_mosaic.version = 11 : i64} {
  func.func @_mha_kernel(%arg0: memref<24x8x33xf32, #tpu.memory_space<vmem>>, %arg1: memref<24x33x9xf32, #tpu.memory_space<vmem>>, %arg2: memref<8x9x32xf32, #tpu.memory_space<vmem>>, %arg3: memref<2x8x32xf32, #tpu.memory_space<vmem>>, %arg4: memref<8x8x8xf32, #tpu.memory_space<vmem>>) attributes {dimension_semantics = [], scalar_prefetch = 0 : i64, scratch_operands = 0 : i64, tpu.core_type = #tpu.core_type<tc>} {
    %c0 = arith.constant 0 : index
    %c0_0 = arith.constant 0 : index
    %c0_1 = arith.constant 0 : index
    %0 = vector.load %arg0[%c0, %c0_0, %c0_1] : memref<24x8x33xf32, #tpu.memory_space<vmem>>, vector<24x8x33xf32>
    %c0_2 = arith.constant 0 : index
    %c0_3 = arith.constant 0 : index
    %c0_4 = arith.constant 0 : index
    %1 = vector.load %arg1[%c0_2, %c0_3, %c0_4] : memref<24x33x9xf32, #tpu.memory_space<vmem>>, vector<24x33x9xf32>
    "tpu.trace_start"() <{level = 10 : i32, message = "nld,nde->nle"}> : () -> ()
    %cst = arith.constant dense<0.000000e+00> : vector<24x8x9xf32>
    %2 = tpu.matmul %0, %1, %cst {dimension_numbers = #tpu.dot_dimension_numbers<[2], [1], [1], [2], [0, 0, 0, 1, 1, 2], [0], [0]>} : vector<24x8x33xf32>, vector<24x33x9xf32>, vector<24x8x9xf32> -> vector<24x8x9xf32>
    "tpu.trace_stop"() : () -> ()
    %3 = vector.extract_strided_slice %2 {offsets = [0, 0, 0], sizes = [8, 8, 9], strides = [1, 1, 1]} : vector<24x8x9xf32> to vector<8x8x9xf32>
    %4 = vector.extract_strided_slice %2 {offsets = [8, 0, 0], sizes = [8, 8, 9], strides = [1, 1, 1]} : vector<24x8x9xf32> to vector<8x8x9xf32>
    %5 = vector.extract_strided_slice %2 {offsets = [16, 0, 0], sizes = [8, 8, 9], strides = [1, 1, 1]} : vector<24x8x9xf32> to vector<8x8x9xf32>
    "tpu.trace_start"() <{level = 10 : i32, message = "nqd,nkd->nqk"}> : () -> ()
    %cst_5 = arith.constant dense<0.000000e+00> : vector<8x8x8xf32>
    %6 = tpu.matmul %3, %4, %cst_5 {dimension_numbers = #tpu.dot_dimension_numbers<[2], [2], [1], [1], [0, 0, 0, 1, 1, 1], [0], [0]>} : vector<8x8x9xf32>, vector<8x8x9xf32>, vector<8x8x8xf32> -> vector<8x8x8xf32>
    "tpu.trace_stop"() : () -> ()
    %cst_6 = arith.constant 0.353553385 : f32
    %7 = vector.broadcast %cst_6 : f32 to vector<8x8x8xf32>
    %8 = arith.mulf %6, %7 : vector<8x8x8xf32>
    %cst_7 = arith.constant dense<0xFF800000> : vector<8x8xf32>
    %9 = vector.multi_reduction <maximumf>, %8, %cst_7 [2] : vector<8x8x8xf32> to vector<8x8xf32>
    %10 = vector.shape_cast %9 : vector<8x8xf32> to vector<8x8x1xf32>
    %11 = vector.broadcast %10 : vector<8x8x1xf32> to vector<8x8x8xf32>
    %12 = arith.subf %8, %11 : vector<8x8x8xf32>
    %13 = math.exp %12 : vector<8x8x8xf32>
    %cst_8 = arith.constant dense<0.000000e+00> : vector<8x8xf32>
    %14 = vector.multi_reduction <add>, %13, %cst_8 [2] : vector<8x8x8xf32> to vector<8x8xf32>
    %15 = vector.shape_cast %14 : vector<8x8xf32> to vector<8x8x1xf32>
    %16 = tpu.reciprocal %15 {approx = true} : vector<8x8x1xf32> -> vector<8x8x1xf32>
    %17 = arith.mulf %15, %16 : vector<8x8x1xf32>
    %cst_9 = arith.constant 2.000000e+00 : f32
    %18 = vector.broadcast %cst_9 : f32 to vector<8x8x1xf32>
    %19 = arith.subf %18, %17 : vector<8x8x1xf32>
    %20 = arith.mulf %16, %19 : vector<8x8x1xf32>
    %21 = vector.broadcast %20 : vector<8x8x1xf32> to vector<8x8x8xf32>
    %22 = arith.mulf %13, %21 : vector<8x8x8xf32>
    %c0_10 = arith.constant 0 : index
    %c0_11 = arith.constant 0 : index
    %c0_12 = arith.constant 0 : index
    %23 = vector.load %arg4[%c0_10, %c0_11, %c0_12] : memref<8x8x8xf32, #tpu.memory_space<vmem>>, vector<8x8x8xf32>
    tpu.vector_store %arg4[%c0_10, %c0_11, %c0_12], %22 {strides = array<i32>} : memref<8x8x8xf32, #tpu.memory_space<vmem>>, vector<8x8x8xf32>,
    "tpu.trace_start"() <{level = 10 : i32, message = "nqk,nkd->nqd"}> : () -> ()
    %cst_13 = arith.constant dense<0.000000e+00> : vector<8x8x9xf32>
    %24 = tpu.matmul %22, %5, %cst_13 {dimension_numbers = #tpu.dot_dimension_numbers<[2], [1], [1], [2], [0, 0, 0, 1, 1, 2], [0], [0]>} : vector<8x8x8xf32>, vector<8x8x9xf32>, vector<8x8x9xf32> -> vector<8x8x9xf32>
    "tpu.trace_stop"() : () -> ()
    %c0_14 = arith.constant 0 : index
    %c0_15 = arith.constant 0 : index
    %c0_16 = arith.constant 0 : index
    %25 = vector.load %arg2[%c0_14, %c0_15, %c0_16] : memref<8x9x32xf32, #tpu.memory_space<vmem>>, vector<8x9x32xf32>
    "tpu.trace_start"() <{level = 10 : i32, message = "nld,ndo->nlo"}> : () -> ()
    %cst_17 = arith.constant dense<0.000000e+00> : vector<8x8x32xf32>
    %26 = tpu.matmul %24, %25, %cst_17 {dimension_numbers = #tpu.dot_dimension_numbers<[2], [1], [1], [2], [0, 0, 0, 1, 1, 2], [0], [0]>} : vector<8x8x9xf32>, vector<8x9x32xf32>, vector<8x8x32xf32> -> vector<8x8x32xf32>
    "tpu.trace_stop"() : () -> ()
    %27 = vector.shape_cast %26 : vector<8x8x32xf32> to vector<2x4x8x32xf32>
    %cst_18 = arith.constant dense<0.000000e+00> : vector<2x8x32xf32>
    %28 = vector.multi_reduction <add>, %27, %cst_18 [1] : vector<2x4x8x32xf32> to vector<2x8x32xf32>
    %c0_19 = arith.constant 0 : index
    %c0_20 = arith.constant 0 : index
    %c0_21 = arith.constant 0 : index
    %29 = vector.load %arg3[%c0_19, %c0_20, %c0_21] : memref<2x8x32xf32, #tpu.memory_space<vmem>>, vector<2x8x32xf32>
    tpu.vector_store %arg3[%c0_19, %c0_20, %c0_21], %28 {strides = array<i32>} : memref<2x8x32xf32, #tpu.memory_space<vmem>>, vector<2x8x32xf32>,
    return
  }
}

</mosaic_0001>

<bundles_post_ra>
// kernel: tpu_custom_call.1
= control target key start
LH: loop header
LB: loop body
LE: loop exit
PB: predicated region body
PF: predicated region fallthrough
CT: control target
= control target key end

     0   :  { %10 = vsyncpa [#allocation3], 0  ;;  %v4983_v3 = vmov 0.0|0.0   ;;  %vm4984_vm0 = vmmov 0   ;;  %v4985_v11 = vmov 0.0   ;;  %vm166_vm1 = vcmask 1040384   ;;  %s5895_s0 = inlined_call_operand.vmem [shape: f32[24,8,33], index: 0, kind: input, shape index: {}]   ;;  %s5896_s1 = inlined_call_operand.vmem [shape: f32[24,33,9], index: 1, kind: input, shape index: {}]   ;;  %s5897_s2 = inlined_call_operand.vmem [shape: f32[8,9,32], index: 2, kind: input, shape index: {}]   ;;  %s5898_s3 = inlined_call_operand.hbm [shape: f32[2,8,32], index: 3, kind: output, shape index: {0}]   ;;  %s5899_s4 = inlined_call_operand.hbm [shape: f32[8,8,8], index: 4, kind: output, shape index: {1}]  }
   0x1   :  { %v42_v0 = vld [vmem:[%s5896_s1] sm:$0xff]  ;;  %v43_v1 = vld [vmem:[%s5896_s1 + $0x8] sm:$0xff]  ;;  %4719 = vmatprep.subr.bf16.mxu0 %v4983_v3  ;;  %4725 = vmatprep.subr.bf16.mxu1 %v4983_v3  ;;  %v48_v5 = vld [vmem:[%s5896_s1 + $0x30] sm:$0xff]  ;;  %vm162_vm2 = vcmask 269312  }
   0x2   :  { %v47_v2 = vld [vmem:[%s5896_s1 + $0x28] sm:$0xff]  ;;  %v4720_v4 = vpack.c.bf16 %v43_v1, %v42_v0  ;;  %v44_v6 = vld [vmem:[%s5896_s1 + $0x10] sm:$0xff]  ;;  %v45_v7 = vld [vmem:[%s5896_s1 + $0x18] sm:$0xff]  ;;  %4281 = vmatprep.mubr.msk.f32.mxu0 %vm4984_vm0, %v4985_v11  ;;  %4294 = vmatprep.mubr.msk.f32.mxu1 %vm4984_vm0, %v4985_v11 }
   0x3   :  { %v4726_v8 = vpack.c.bf16 %v48_v5, %v47_v2  ;;  %v49_v9 = vld [vmem:[%s5896_s1 + $0x38] sm:$0xff]  ;;  %v50_v10 = vld [vmem:[%s5896_s1 + $0x40] sm:$0xff]  ;;  %v4723_v12 = vpack.c.bf16 %v45_v7, %v44_v6  ;;  %v52_v14 = vld [vmem:[%s5896_s1 + $0x50] sm:$0xff] }
   0x4   :  { %4721 = vmatpush3.bf16.msra.mxu0 %v4720_v4  ;;  %v4729_v13 = vpack.c.bf16 %v50_v10, %v49_v9  ;;  %v53_v15 = vld [vmem:[%s5896_s1 + $0x58] sm:$0xff]  ;;  %v46_v16 = vld [vmem:[%s5896_s1 + $0x20] sm:$0x1]  ;;  %v51_v19 = vld [vmem:[%s5896_s1 + $0x48] sm:$0x1] }
   0x5   :  { %4727 = vmatpush3.bf16.msra.mxu1 %v4726_v8  ;;  %4722 = vmatprep.subr.bf16.mxu0 %v4983_v3  ;;  %v57_v17 = vld [vmem:[%s5896_s1 + $0x78] sm:$0xff]  ;;  %v58_v18 = vld [vmem:[%s5896_s1 + $0x80] sm:$0xff]  ;;  %v4732_v21 = vpack.c.bf16 %v53_v15, %v52_v14  ;;  %v19_v22 = vld [vmem:[%s5895_s0 + $0x8] sm:$0xff] }
   0x6   :  { %4728 = vmatprep.subr.bf16.mxu1 %v4983_v3  ;;  %v18_v20 = vld [vmem:[%s5895_s0] sm:$0xff]  ;;  %v4738_v23 = vpack.c.bf16 %v58_v18, %v57_v17  ;;  %v55_v25 = vld [vmem:[%s5896_s1 + $0x68] sm:$0xff]  ;;  %v60_v27 = vld [vmem:[%s5896_s1 + $0x90] sm:$0xff] }
   0x7   :  { %v54_v24 = vld [vmem:[%s5896_s1 + $0x60] sm:$0xff]  ;;  %v59_v26 = vld [vmem:[%s5896_s1 + $0x88] sm:$0xff]  ;;  %v56_v32 = vld [vmem:[%s5896_s1 + $0x70] sm:$0x1] }
   0x8   :  { %4724 = vmatpush3.bf16.msra.mxu0 %v4723_v12  ;;  %v4735_v28 = vpack.c.bf16 %v55_v25, %v54_v24  ;;  %v4741_v29 = vpack.c.bf16 %v60_v27, %v59_v26  ;;  %v62_v30 = vld [vmem:[%s5896_s1 + $0xa0] sm:$0xff]  ;;  %v63_v31 = vld [vmem:[%s5896_s1 + $0xa8] sm:$0xff]  ;;  %v68_v34 = vld [vmem:[%s5896_s1 + $0xd0] sm:$0xff] }
   0x9   :  { %4730 = vmatpush3.bf16.msra.mxu1 %v4729_v13  ;;  %4279 = vmatprep.subr.mxu0 %v4985_v11  ;;  %v67_v33 = vld [vmem:[%s5896_s1 + $0xc8] sm:$0xff]  ;;  %v61_v35 = vld [vmem:[%s5896_s1 + $0x98] sm:$0x1]  ;;  %v20_v36 = vld [vmem:[%s5895_s0 + $0x10] sm:$0xff]  ;;  %v4744_v37 = vpack.c.bf16 %v63_v31, %v62_v30 }
   0xa   :  { %4292 = vmatprep.subr.mxu1 %v4985_v11  ;;  %v21_v38 = vld [vmem:[%s5895_s0 + $0x18] sm:$0xff]  ;;  %v4750_v39 = vpack.c.bf16 %v68_v34, %v67_v33  ;;  %v64_v40 = vld [vmem:[%s5896_s1 + $0xb0] sm:$0xff]  ;;  %v70_v43 = vld [vmem:[%s5896_s1 + $0xe0] sm:$0xff] }
   0xb   :  { %v65_v41 = vld [vmem:[%s5896_s1 + $0xb8] sm:$0xff]  ;;  %v72_v46 = vld [vmem:[%s5896_s1 + $0xf0] sm:$0xff]  ;;  %v66_v48 = vld [vmem:[%s5896_s1 + $0xc0] sm:$0x1] }
   0xc   :  { %4280 = vmatpush3.msk.msra.mxu0 %vm166_vm1, %v46_v16  ;;  %v69_v42 = vld [vmem:[%s5896_s1 + $0xd8] sm:$0xff]  ;;  %v4747_v44 = vpack.c.bf16 %v65_v41, %v64_v40  ;;  %v78_v50 = vld [vmem:[%s5896_s1 + $0x120] sm:$0xff]  ;;  %v71_v51 = vld [vmem:[%s5896_s1 + $0xe8] sm:$0x1] }
   0xd   :  { %4293 = vmatpush3.msk.msra.mxu1 %vm166_vm1, %v51_v19  ;;  %4282 = vmatmul.mubr.msk.f32.vlgmr.msra.gmra.mrb[0].mxu0 %vm162_vm2, %v18_v20  ;;  %v4753_v45 = vpack.c.bf16 %v70_v43, %v69_v42  ;;  %v73_v47 = vld [vmem:[%s5896_s1 + $0xf8] sm:$0xff]  ;;  %v22_v52 = vld [vmem:[%s5895_s0 + $0x20] sm:$0xff]  ;;  %v23_v53 = vld [vmem:[%s5895_s0 + $0x28] sm:$0xff] }
   0xe   :  { %4731 = vmatprep.subr.bf16.mxu0 %v4983_v3  ;;  %4737 = vmatprep.subr.bf16.mxu1 %v4983_v3  ;;  %v77_v49 = vld [vmem:[%s5896_s1 + $0x118] sm:$0xff]  ;;  %v4756_v54 = vpack.c.bf16 %v73_v47, %v72_v46  ;;  %v74_v56 = vld [vmem:[%s5896_s1 + $0x100] sm:$0xff]  ;;  %v75_v57 = vld [vmem:[%s5896_s1 + $0x108] sm:$0xff] }
   0xf   :  { %4295 = vmatmul.mubr.msk.f32.vlgmr.msra.gmra.mrb[0].mxu1 %vm162_vm2, %v19_v22  ;;  %4733 = vmatpush3.bf16.msra.mxu0 %v4732_v21  ;;  %v4762_v55 = vpack.c.bf16 %v78_v50, %v77_v49 }
  0x10   :  { %4739 = vmatpush3.bf16.msra.mxu1 %v4738_v23  ;;  %4734 = vmatprep.subr.bf16.mxu0 %v4983_v3 }
  0x11   :  { %4740 = vmatprep.subr.bf16.mxu1 %v4983_v3  ;;  %4307 = vmatprep.mubr.msk.f32.mxu0 %vm4984_vm0, %v4985_v11 }
  0x12   :  { %4320 = vmatprep.mubr.msk.f32.mxu1 %vm4984_vm0, %v4985_v11 }
  0x13   :  { %4736 = vmatpush3.bf16.msra.mxu0 %v4735_v28 }
  0x14   :  { %4742 = vmatpush3.bf16.msra.mxu1 %v4741_v29  ;;  %4305 = vmatprep.subr.mxu0 %v4985_v11 }
  0x15   :  { %4318 = vmatprep.subr.mxu1 %v4985_v11 }
  0x17   :  { %4306 = vmatpush3.msk.msra.mxu0 %vm166_vm1, %v56_v32 }
  0x18   :  { %4319 = vmatpush3.msk.msra.mxu1 %vm166_vm1, %v61_v35  ;;  %4308 = vmatmul.mubr.msk.f32.vlgmr.msra.gmra.mrb[2].mxu0 %vm162_vm2, %v20_v36 }
  0x19   :  { %4743 = vmatprep.subr.bf16.mxu0 %v4983_v3  ;;  %4749 = vmatprep.subr.bf16.mxu1 %v4983_v3 }
  0x1a   :  { %4321 = vmatmul.mubr.msk.f32.vlgmr.msra.gmra.mrb[2].mxu1 %vm162_vm2, %v21_v38  ;;  %4745 = vmatpush3.bf16.msra.mxu0 %v4744_v37 }
  0x1b   :  { %4751 = vmatpush3.bf16.msra.mxu1 %v4750_v39  ;;  %4746 = vmatprep.subr.bf16.mxu0 %v4983_v3 }
  0x1c   :  { %4752 = vmatprep.subr.bf16.mxu1 %v4983_v3  ;;  %4333 = vmatprep.mubr.msk.f32.mxu0 %vm4984_vm0, %v4985_v11 }
  0x1d   :  { %4346 = vmatprep.mubr.msk.f32.mxu1 %vm4984_vm0, %v4985_v11 }
  0x1e   :  { %4748 = vmatpush3.bf16.msra.mxu0 %v4747_v44 }
  0x1f   :  { %4754 = vmatpush3.bf16.msra.mxu1 %v4753_v45  ;;  %4331 = vmatprep.subr.mxu0 %v4985_v11 }
  0x20   :  { %4344 = vmatprep.subr.mxu1 %v4985_v11 }
  0x22   :  { %4332 = vmatpush3.msk.msra.mxu0 %vm166_vm1, %v66_v48 }
  0x23   :  { %11 = vsyncpa [#allocation5], 0  ;;  %4345 = vmatpush3.msk.msra.mxu1 %vm166_vm1, %v71_v51  ;;  %4334 = vmatmul.mubr.msk.f32.vlgmr.msra.gmra.mrb[4].mxu0 %vm162_vm2, %v22_v52  ;;  %v79_v58 = vld [vmem:[%s5896_s1 + $0x128] sm:$0xff]  ;;  %v80_v59 = vld [vmem:[%s5896_s1 + $0x130] sm:$0xff]  ;;  %v4759_v60 = vpack.c.bf16 %v75_v57, %v74_v56  ;;  %vm1988_vm3 = vcmask 72704   ;;  %vm2605_vm4 = vcmask 64512  }
  0x24   :  { %4755 = vmatprep.subr.bf16.mxu0 %v4983_v3  ;;  %4761 = vmatprep.subr.bf16.mxu1 %v4983_v3  ;;  %v4765_v61 = vpack.c.bf16 %v80_v59, %v79_v58  ;;  %v82_v62 = vld [vmem:[%s5896_s1 + $0x140] sm:$0xff]  ;;  %v83_v63 = vld [vmem:[%s5896_s1 + $0x148] sm:$0xff]  ;;  %v76_v0 = vld [vmem:[%s5896_s1 + $0x110] sm:$0x1]  ;;  %vm4986_vm5 = vmmov 1  }
  0x25   :  { %4347 = vmatmul.mubr.msk.f32.vlgmr.msra.gmra.mrb[4].mxu1 %vm162_vm2, %v23_v53  ;;  %4757 = vmatpush3.bf16.msra.mxu0 %v4756_v54  ;;  %v87_v1 = vld [vmem:[%s5896_s1 + $0x168] sm:$0xff]  ;;  %v88_v2 = vld [vmem:[%s5896_s1 + $0x170] sm:$0xff]  ;;  %v81_v4 = vld [vmem:[%s5896_s1 + $0x138] sm:$0x1]  ;;  %v4768_v6 = vpack.c.bf16 %v83_v63, %v82_v62 }
  0x26   :  { %4763 = vmatpush3.bf16.msra.mxu1 %v4762_v55  ;;  %4758 = vmatprep.subr.bf16.mxu0 %v4983_v3  ;;  %v24_v5 = vld [vmem:[%s5895_s0 + $0x30] sm:$0xff]  ;;  %v25_v7 = vld [vmem:[%s5895_s0 + $0x38] sm:$0xff]  ;;  %v4774_v8 = vpack.c.bf16 %v88_v2, %v87_v1  ;;  %v90_v13 = vld [vmem:[%s5896_s1 + $0x180] sm:$0xff] }
  0x27   :  { %4764 = vmatprep.subr.bf16.mxu1 %v4983_v3  ;;  %4359 = vmatprep.mubr.msk.f32.mxu0 %vm4984_vm0, %v4985_v11  ;;  %v84_v9 = vld [vmem:[%s5896_s1 + $0x150] sm:$0xff]  ;;  %v85_v10 = vld [vmem:[%s5896_s1 + $0x158] sm:$0xff]  ;;  %v86_v18 = vld [vmem:[%s5896_s1 + $0x160] sm:$0x1] }
  0x28   :  { %4372 = vmatprep.mubr.msk.f32.mxu1 %vm4984_vm0, %v4985_v11  ;;  %v89_v12 = vld [vmem:[%s5896_s1 + $0x178] sm:$0xff]  ;;  %v4771_v14 = vpack.c.bf16 %v85_v10, %v84_v9  ;;  %v92_v16 = vld [vmem:[%s5896_s1 + $0x190] sm:$0xff]  ;;  %v98_v20 = vld [vmem:[%s5896_s1 + $0x1c0] sm:$0xff] }
  0x29   :  { %4760 = vmatpush3.bf16.msra.mxu0 %v4759_v60  ;;  %v4777_v15 = vpack.c.bf16 %v90_v13, %v89_v12  ;;  %v93_v17 = vld [vmem:[%s5896_s1 + $0x198] sm:$0xff]  ;;  %v91_v21 = vld [vmem:[%s5896_s1 + $0x188] sm:$0x1]  ;;  %v26_v22 = vld [vmem:[%s5895_s0 + $0x40] sm:$0xff] }
  0x2a   :  { %4766 = vmatpush3.bf16.msra.mxu1 %v4765_v61  ;;  %4357 = vmatprep.subr.mxu0 %v4985_v11  ;;  %v97_v19 = vld [vmem:[%s5896_s1 + $0x1b8] sm:$0xff]  ;;  %v27_v23 = vld [vmem:[%s5895_s0 + $0x48] sm:$0xff]  ;;  %v4780_v24 = vpack.c.bf16 %v93_v17, %v92_v16  ;;  %v94_v26 = vld [vmem:[%s5896_s1 + $0x1a0] sm:$0xff] }
  0x2b   :  { %4370 = vmatprep.subr.mxu1 %v4985_v11  ;;  %v4786_v25 = vpack.c.bf16 %v98_v20, %v97_v19  ;;  %v95_v27 = vld [vmem:[%s5896_s1 + $0x1a8] sm:$0xff]  ;;  %v100_v29 = vld [vmem:[%s5896_s1 + $0x1d0] sm:$0xff]  ;;  %v102_v32 = vld [vmem:[%s5896_s1 + $0x1e0] sm:$0xff] }
  0x2c   :  { %v99_v28 = vld [vmem:[%s5896_s1 + $0x1c8] sm:$0xff]  ;;  %v4783_v30 = vpack.c.bf16 %v95_v27, %v94_v26  ;;  %v96_v34 = vld [vmem:[%s5896_s1 + $0x1b0] sm:$0x1]  ;;  %v101_v37 = vld [vmem:[%s5896_s1 + $0x1d8] sm:$0x1] }
  0x2d   :  { %4358 = vmatpush3.msk.msra.mxu0 %vm166_vm1, %v76_v0  ;;  %v4789_v31 = vpack.c.bf16 %v100_v29, %v99_v28  ;;  %v103_v33 = vld [vmem:[%s5896_s1 + $0x1e8] sm:$0xff]  ;;  %v108_v36 = vld [vmem:[%s5896_s1 + $0x210] sm:$0xff]  ;;  %v29_v39 = vld [vmem:[%s5895_s0 + $0x58] sm:$0xff] }
  0x2e   :  { %4371 = vmatpush3.msk.msra.mxu1 %vm166_vm1, %v81_v4  ;;  %4360 = vmatmul.mubr.msk.f32.vlgmr.msra.gmra.mrb[6].mxu0 %vm162_vm2, %v24_v5  ;;  %v107_v35 = vld [vmem:[%s5896_s1 + $0x208] sm:$0xff]  ;;  %v28_v38 = vld [vmem:[%s5895_s0 + $0x50] sm:$0xff]  ;;  %v4792_v40 = vpack.c.bf16 %v103_v33, %v102_v32  ;;  %v105_v43 = vld [vmem:[%s5896_s1 + $0x1f8] sm:$0xff] }
  0x2f   :  { %4767 = vmatprep.subr.bf16.mxu0 %v4983_v3  ;;  %4773 = vmatprep.subr.bf16.mxu1 %v4983_v3  ;;  %v4798_v41 = vpack.c.bf16 %v108_v36, %v107_v35  ;;  %v104_v42 = vld [vmem:[%s5896_s1 + $0x1f0] sm:$0xff]  ;;  %v109_v44 = vld [vmem:[%s5896_s1 + $0x218] sm:$0xff]  ;;  %v110_v45 = vld [vmem:[%s5896_s1 + $0x220] sm:$0xff] }
  0x30   :  { %4373 = vmatmul.mubr.msk.f32.vlgmr.msra.gmra.mrb[6].mxu1 %vm162_vm2, %v25_v7  ;;  %4769 = vmatpush3.bf16.msra.mxu0 %v4768_v6  ;;  %v4795_v46 = vpack.c.bf16 %v105_v43, %v104_v42  ;;  %v4801_v47 = vpack.c.bf16 %v110_v45, %v109_v44  ;;  %v112_v48 = vld [vmem:[%s5896_s1 + $0x230] sm:$0xff]  ;;  %v113_v49 = vld [vmem:[%s5896_s1 + $0x238] sm:$0xff]  ;;  %v106_v50 = vld [vmem:[%s5896_s1 + $0x200] sm:$0x1] }
  0x31   :  { %4775 = vmatpush3.bf16.msra.mxu1 %v4774_v8  ;;  %4770 = vmatprep.subr.bf16.mxu0 %v4983_v3  ;;  %v117_v51 = vld [vmem:[%s5896_s1 + $0x258] sm:$0xff]  ;;  %v118_v52 = vld [vmem:[%s5896_s1 + $0x260] sm:$0xff]  ;;  %v111_v53 = vld [vmem:[%s5896_s1 + $0x228] sm:$0x1]  ;;  %v4804_v56 = vpack.c.bf16 %v113_v49, %v112_v48 }
  0x32   :  { %4776 = vmatprep.subr.bf16.mxu1 %v4983_v3  ;;  %4385 = vmatprep.mubr.msk.f32.mxu0 %vm4984_vm0, %v4985_v11  ;;  %v30_v54 = vld [vmem:[%s5895_s0 + $0x60] sm:$0xff]  ;;  %v31_v55 = vld [vmem:[%s5895_s0 + $0x68] sm:$0xff]  ;;  %v4810_v57 = vpack.c.bf16 %v118_v52, %v117_v51  ;;  %v120_v61 = vld [vmem:[%s5896_s1 + $0x270] sm:$0xff] }
  0x33   :  { %4398 = vmatprep.mubr.msk.f32.mxu1 %vm4984_vm0, %v4985_v11  ;;  %v114_v58 = vld [vmem:[%s5896_s1 + $0x240] sm:$0xff]  ;;  %v115_v59 = vld [vmem:[%s5896_s1 + $0x248] sm:$0xff]  ;;  %v116_v2 = vld [vmem:[%s5896_s1 + $0x250] sm:$0x1] }
  0x34   :  { %4772 = vmatpush3.bf16.msra.mxu0 %v4771_v14  ;;  %v119_v60 = vld [vmem:[%s5896_s1 + $0x268] sm:$0xff]  ;;  %v4807_v62 = vpack.c.bf16 %v115_v59, %v114_v58  ;;  %v122_v0 = vld [vmem:[%s5896_s1 + $0x280] sm:$0xff]  ;;  %v128_v5 = vld [vmem:[%s5896_s1 + $0x2b0] sm:$0xff] }
  0x35   :  { %4778 = vmatpush3.bf16.msra.mxu1 %v4777_v15  ;;  %4383 = vmatprep.subr.mxu0 %v4985_v11  ;;  %v4813_v63 = vpack.c.bf16 %v120_v61, %v119_v60  ;;  %v123_v1 = vld [vmem:[%s5896_s1 + $0x288] sm:$0xff]  ;;  %v121_v6 = vld [vmem:[%s5896_s1 + $0x278] sm:$0x1]  ;;  %v32_v7 = vld [vmem:[%s5895_s0 + $0x70] sm:$0xff] }
  0x36   :  { %4396 = vmatprep.subr.mxu1 %v4985_v11  ;;  %v127_v4 = vld [vmem:[%s5896_s1 + $0x2a8] sm:$0xff]  ;;  %v33_v8 = vld [vmem:[%s5895_s0 + $0x78] sm:$0xff]  ;;  %v4816_v9 = vpack.c.bf16 %v123_v1, %v122_v0  ;;  %v124_v12 = vld [vmem:[%s5896_s1 + $0x290] sm:$0xff] }
  0x37   :  { %v4822_v10 = vpack.c.bf16 %v128_v5, %v127_v4  ;;  %v125_v13 = vld [vmem:[%s5896_s1 + $0x298] sm:$0xff]  ;;  %v130_v16 = vld [vmem:[%s5896_s1 + $0x2c0] sm:$0xff]  ;;  %v132_v19 = vld [vmem:[%s5896_s1 + $0x2d0] sm:$0xff] }
  0x38   :  { %4384 = vmatpush3.msk.msra.mxu0 %vm166_vm1, %v86_v18  ;;  %v129_v14 = vld [vmem:[%s5896_s1 + $0x2b8] sm:$0xff]  ;;  %v4819_v15 = vpack.c.bf16 %v125_v13, %v124_v12  ;;  %v126_v18 = vld [vmem:[%s5896_s1 + $0x2a0] sm:$0x1]  ;;  %v35_v26 = vld [vmem:[%s5895_s0 + $0x88] sm:$0xff] }
  0x39   :  { %4397 = vmatpush3.msk.msra.mxu1 %vm166_vm1, %v91_v21  ;;  %4386 = vmatmul.mubr.msk.f32.vlgmr.msra.gmra.mrb[8].mxu0 %vm162_vm2, %v26_v22  ;;  %v4825_v17 = vpack.c.bf16 %v130_v16, %v129_v14  ;;  %v133_v20 = vld [vmem:[%s5896_s1 + $0x2d8] sm:$0xff]  ;;  %v131_v21 = vld [vmem:[%s5896_s1 + $0x2c8] sm:$0x1]  ;;  %v134_v28 = vld [vmem:[%s5896_s1 + $0x2e0] sm:$0xff] }
  0x3a   :  { %4399 = vmatmul.mubr.msk.f32.vlgmr.msra.gmra.mrb[8].mxu1 %vm162_vm2, %v27_v23  ;;  %4779 = vmatprep.subr.bf16.mxu0 %v4983_v3  ;;  %v137_v22 = vld [vmem:[%s5896_s1 + $0x2f8] sm:$0xff]  ;;  %v138_v23 = vld [vmem:[%s5896_s1 + $0x300] sm:$0xff]  ;;  %v135_v29 = vld [vmem:[%s5896_s1 + $0x2e8] sm:$0xff] }
  0x3b   :  { %4785 = vmatprep.subr.bf16.mxu1 %v4983_v3  ;;  %4781 = vmatpush3.bf16.msra.mxu0 %v4780_v24  ;;  %v34_v24 = vld [vmem:[%s5895_s0 + $0x80] sm:$0xff]  ;;  %v4834_v27 = vpack.c.bf16 %v138_v23, %v137_v22  ;;  %v140_v32 = vld [vmem:[%s5896_s1 + $0x310] sm:$0xff]  ;;  %v143_v36 = vld [vmem:[%s5896_s1 + $0x328] sm:$0xff] }
  0x3c   :  { %4787 = vmatpush3.bf16.msra.mxu1 %v4786_v25  ;;  %4782 = vmatprep.subr.bf16.mxu0 %v4983_v3  ;;  %v4828_v25 = vpack.c.bf16 %v133_v20, %v132_v19  ;;  %v142_v35 = vld [vmem:[%s5896_s1 + $0x320] sm:$0xff]  ;;  %v37_v42 = vld [vmem:[%s5895_s0 + $0x98] sm:$0xff]  ;;  %v144_v44 = vld [vmem:[%s5896_s1 + $0x330] sm:$0xff] }
  0x3d   :  { %4788 = vmatprep.subr.bf16.mxu1 %v4983_v3  ;;  %4411 = vmatprep.mubr.msk.f32.mxu0 %vm4984_vm0, %v4985_v11  ;;  %v145_v45 = vld [vmem:[%s5896_s1 + $0x338] sm:$0xff]  ;;  %v150_v48 = vld [vmem:[%s5896_s1 + $0x360] sm:$0xff]  ;;  %v152_v51 = vld [vmem:[%s5896_s1 + $0x370] sm:$0xff] }
  0x3e   :  { %4424 = vmatprep.mubr.msk.f32.mxu1 %vm4984_vm0, %v4985_v11  ;;  %v153_v52 = vld [vmem:[%s5896_s1 + $0x378] sm:$0xff]  ;;  %v39_v58 = vld [vmem:[%s5895_s0 + $0xa8] sm:$0xff]  ;;  %v154_v60 = vld [vmem:[%s5896_s1 + $0x380] sm:$0xff] }
  0x3f   :  { %4784 = vmatpush3.bf16.msra.mxu0 %v4783_v30  ;;  %v139_v30 = vld [vmem:[%s5896_s1 + $0x308] sm:$0xff]  ;;  %v160_v0 = vld [vmem:[%s5896_s1 + $0x3b0] sm:$0xff]  ;;  %v161_v4 = vld [vmem:[%s5896_s1 + $0x3b8] sm:$0x1] }
  0x40   :  { %4790 = vmatpush3.bf16.msra.mxu1 %v4789_v31  ;;  %4409 = vmatprep.subr.mxu0 %v4985_v11  ;;  %v4831_v31 = vpack.c.bf16 %v135_v29, %v134_v28  ;;  %v4837_v33 = vpack.c.bf16 %v140_v32, %v139_v30  ;;  %v155_v61 = vld [vmem:[%s5896_s1 + $0x388] sm:$0xff]  ;;  %v40_v5 = vld [vmem:[%s5895_s0 + $0xb0] sm:$0xff]  ;;  %vm5758_vm6 = vmpackc.low %vm166_vm1, %vm4986_vm5 }
  0x41   :  { %4422 = vmatprep.subr.mxu1 %v4985_v11 }
  0x43   :  { %4410 = vmatpush3.msk.msra.mxu0 %vm166_vm1, %v96_v34  ;;  %v136_v34 = vld [vmem:[%s5896_s1 + $0x2f0] sm:$0x1] }
  0x44   :  { %4423 = vmatpush3.msk.msra.mxu1 %vm166_vm1, %v101_v37  ;;  %4412 = vmatmul.mubr.msk.f32.vlgmr.msra.gmra.mrb[10].mxu0 %vm162_vm2, %v28_v38  ;;  %v141_v37 = vld [vmem:[%s5896_s1 + $0x318] sm:$0x1]  ;;  %v147_v38 = vld [vmem:[%s5896_s1 + $0x348] sm:$0xff] }
  0x45   :  { %4425 = vmatmul.mubr.msk.f32.vlgmr.msra.gmra.mrb[10].mxu1 %vm162_vm2, %v29_v39  ;;  %4791 = vmatprep.subr.bf16.mxu0 %v4983_v3  ;;  %v148_v39 = vld [vmem:[%s5896_s1 + $0x350] sm:$0xff] }
  0x46   :  { %4797 = vmatprep.subr.bf16.mxu1 %v4983_v3  ;;  %4793 = vmatpush3.bf16.msra.mxu0 %v4792_v40  ;;  %v36_v40 = vld [vmem:[%s5895_s0 + $0x90] sm:$0xff]  ;;  %v4846_v43 = vpack.c.bf16 %v148_v39, %v147_v38 }
  0x47   :  { %4799 = vmatpush3.bf16.msra.mxu1 %v4798_v41  ;;  %4794 = vmatprep.subr.bf16.mxu0 %v4983_v3  ;;  %v4840_v41 = vpack.c.bf16 %v143_v36, %v142_v35 }
  0x48   :  { %4800 = vmatprep.subr.bf16.mxu1 %v4983_v3  ;;  %4437 = vmatprep.mubr.msk.f32.mxu0 %vm4984_vm0, %v4985_v11 }
  0x49   :  { %4450 = vmatprep.mubr.msk.f32.mxu1 %vm4984_vm0, %v4985_v11 }
  0x4a   :  { %4796 = vmatpush3.bf16.msra.mxu0 %v4795_v46  ;;  %v149_v46 = vld [vmem:[%s5896_s1 + $0x358] sm:$0xff] }
  0x4b   :  { %4802 = vmatpush3.bf16.msra.mxu1 %v4801_v47  ;;  %4435 = vmatprep.subr.mxu0 %v4985_v11  ;;  %v4843_v47 = vpack.c.bf16 %v145_v45, %v144_v44  ;;  %v4849_v49 = vpack.c.bf16 %v150_v48, %v149_v46 }
  0x4c   :  { %4448 = vmatprep.subr.mxu1 %v4985_v11 }
  0x4e   :  { %4436 = vmatpush3.msk.msra.mxu0 %vm166_vm1, %v106_v50  ;;  %v146_v50 = vld [vmem:[%s5896_s1 + $0x340] sm:$0x1] }
  0x4f   :  { %4449 = vmatpush3.msk.msra.mxu1 %vm166_vm1, %v111_v53  ;;  %4438 = vmatmul.mubr.msk.f32.vlgmr.msra.gmra.mrb[12].mxu0 %vm162_vm2, %v30_v54  ;;  %v151_v53 = vld [vmem:[%s5896_s1 + $0x368] sm:$0x1]  ;;  %v157_v54 = vld [vmem:[%s5896_s1 + $0x398] sm:$0xff] }
  0x50   :  { %4451 = vmatmul.mubr.msk.f32.vlgmr.msra.gmra.mrb[12].mxu1 %vm162_vm2, %v31_v55  ;;  %4803 = vmatprep.subr.bf16.mxu0 %v4983_v3  ;;  %v158_v55 = vld [vmem:[%s5896_s1 + $0x3a0] sm:$0xff] }
  0x51   :  { %4809 = vmatprep.subr.bf16.mxu1 %v4983_v3  ;;  %4805 = vmatpush3.bf16.msra.mxu0 %v4804_v56  ;;  %v38_v56 = vld [vmem:[%s5895_s0 + $0xa0] sm:$0xff]  ;;  %v4858_v59 = vpack.c.bf16 %v158_v55, %v157_v54 }
  0x52   :  { %4811 = vmatpush3.bf16.msra.mxu1 %v4810_v57  ;;  %4806 = vmatprep.subr.bf16.mxu0 %v4983_v3  ;;  %v4852_v57 = vpack.c.bf16 %v153_v52, %v152_v51 }
  0x53   :  { %4812 = vmatprep.subr.bf16.mxu1 %v4983_v3  ;;  %4463 = vmatprep.mubr.msk.f32.mxu0 %vm4984_vm0, %v4985_v11 }
  0x54   :  { %4476 = vmatprep.mubr.msk.f32.mxu1 %vm4984_vm0, %v4985_v11 }
  0x55   :  { %4808 = vmatpush3.bf16.msra.mxu0 %v4807_v62  ;;  %v159_v62 = vld [vmem:[%s5896_s1 + $0x3a8] sm:$0xff] }
  0x56   :  { %4814 = vmatpush3.bf16.msra.mxu1 %v4813_v63  ;;  %4461 = vmatprep.subr.mxu0 %v4985_v11  ;;  %v4855_v63 = vpack.c.bf16 %v155_v61, %v154_v60  ;;  %v4861_v1 = vpack.c.bf16 %v160_v0, %v159_v62 }
  0x57   :  { %4474 = vmatprep.subr.mxu1 %v4985_v11 }
  0x59   :  { %4462 = vmatpush3.msk.msra.mxu0 %vm166_vm1, %v116_v2  ;;  %v156_v2 = vld [vmem:[%s5896_s1 + $0x390] sm:$0x1] }
  0x5a   :  { %4475 = vmatpush3.msk.msra.mxu1 %vm166_vm1, %v121_v6  ;;  %4464 = vmatmul.mubr.msk.f32.vlgmr.msra.gmra.mrb[14].mxu0 %vm162_vm2, %v32_v7  ;;  %v41_v6 = vld [vmem:[%s5895_s0 + $0xb8] sm:$0xff] }
  0x5b   :  { %4477 = vmatmul.mubr.msk.f32.vlgmr.msra.gmra.mrb[14].mxu1 %vm162_vm2, %v33_v8  ;;  %4815 = vmatprep.subr.bf16.mxu0 %v4983_v3 }
  0x5c   :  { %4821 = vmatprep.subr.bf16.mxu1 %v4983_v3  ;;  %4817 = vmatpush3.bf16.msra.mxu0 %v4816_v9 }
  0x5d   :  { %4823 = vmatpush3.bf16.msra.mxu1 %v4822_v10  ;;  %4818 = vmatprep.subr.bf16.mxu0 %v4983_v3 }
  0x5e   :  { %4824 = vmatprep.subr.bf16.mxu1 %v4983_v3  ;;  %4489 = vmatprep.mubr.msk.f32.mxu0 %vm4984_vm0, %v4985_v11 }
  0x5f   :  { %4502 = vmatprep.mubr.msk.f32.mxu1 %vm4984_vm0, %v4985_v11 }
  0x60   :  { %4820 = vmatpush3.bf16.msra.mxu0 %v4819_v15 }
  0x61   :  { %4826 = vmatpush3.bf16.msra.mxu1 %v4825_v17  ;;  %4487 = vmatprep.subr.mxu0 %v4985_v11 }
  0x62   :  { %4500 = vmatprep.subr.mxu1 %v4985_v11 }
  0x64   :  { %4488 = vmatpush3.msk.msra.mxu0 %vm166_vm1, %v126_v18 }
  0x65   :  { %4501 = vmatpush3.msk.msra.mxu1 %vm166_vm1, %v131_v21  ;;  %4827 = vmatprep.subr.bf16.mxu0 %v4983_v3 }
  0x66   :  { %4833 = vmatprep.subr.bf16.mxu1 %v4983_v3  ;;  %4490 = vmatmul.mubr.msk.f32.vlgmr.msra.gmra.mrb[16].mxu0 %vm162_vm2, %v34_v24 }
  0x67   :  { %4503 = vmatmul.mubr.msk.f32.vlgmr.msra.gmra.mrb[16].mxu1 %vm162_vm2, %v35_v26  ;;  %4829 = vmatpush3.bf16.msra.mxu0 %v4828_v25 }
  0x68   :  { %4835 = vmatpush3.bf16.msra.mxu1 %v4834_v27  ;;  %4830 = vmatprep.subr.bf16.mxu0 %v4983_v3 }
  0x69   :  { %4836 = vmatprep.subr.bf16.mxu1 %v4983_v3  ;;  %4515 = vmatprep.mubr.msk.f32.mxu0 %vm4984_vm0, %v4985_v11 }
  0x6a   :  { %4528 = vmatprep.mubr.msk.f32.mxu1 %vm4984_vm0, %v4985_v11 }
  0x6b   :  { %4832 = vmatpush3.bf16.msra.mxu0 %v4831_v31 }
  0x6c   :  { %4838 = vmatpush3.bf16.msra.mxu1 %v4837_v33  ;;  %4513 = vmatprep.subr.mxu0 %v4985_v11 }
  0x6d   :  { %4526 = vmatprep.subr.mxu1 %v4985_v11 }
  0x6f   :  { %4514 = vmatpush3.msk.msra.mxu0 %vm166_vm1, %v136_v34 }
  0x70   :  { %4527 = vmatpush3.msk.msra.mxu1 %vm166_vm1, %v141_v37  ;;  %4839 = vmatprep.subr.bf16.mxu0 %v4983_v3 }
  0x71   :  { %4845 = vmatprep.subr.bf16.mxu1 %v4983_v3  ;;  %4516 = vmatmul.mubr.msk.f32.vlgmr.msra.gmra.mrb[18].mxu0 %vm162_vm2, %v36_v40 }
  0x72   :  { %4529 = vmatmul.mubr.msk.f32.vlgmr.msra.gmra.mrb[18].mxu1 %vm162_vm2, %v37_v42  ;;  %4841 = vmatpush3.bf16.msra.mxu0 %v4840_v41 }
  0x73   :  { %4847 = vmatpush3.bf16.msra.mxu1 %v4846_v43  ;;  %4842 = vmatprep.subr.bf16.mxu0 %v4983_v3 }
  0x74   :  { %4848 = vmatprep.subr.bf16.mxu1 %v4983_v3  ;;  %4541 = vmatprep.mubr.msk.f32.mxu0 %vm4984_vm0, %v4985_v11 }
  0x75   :  { %4554 = vmatprep.mubr.msk.f32.mxu1 %vm4984_vm0, %v4985_v11 }
  0x76   :  { %4844 = vmatpush3.bf16.msra.mxu0 %v4843_v47 }
  0x77   :  { %4850 = vmatpush3.bf16.msra.mxu1 %v4849_v49  ;;  %4539 = vmatprep.subr.mxu0 %v4985_v11 }
  0x78   :  { %4552 = vmatprep.subr.mxu1 %v4985_v11 }
  0x7a   :  { %4540 = vmatpush3.msk.msra.mxu0 %vm166_vm1, %v146_v50 }
  0x7b   :  { %4553 = vmatpush3.msk.msra.mxu1 %vm166_vm1, %v151_v53  ;;  %4851 = vmatprep.subr.bf16.mxu0 %v4983_v3 }
  0x7c   :  { %4857 = vmatprep.subr.bf16.mxu1 %v4983_v3  ;;  %4542 = vmatmul.mubr.msk.f32.vlgmr.msra.gmra.mrb[20].mxu0 %vm162_vm2, %v38_v56 }
  0x7d   :  { %4555 = vmatmul.mubr.msk.f32.vlgmr.msra.gmra.mrb[20].mxu1 %vm162_vm2, %v39_v58  ;;  %4853 = vmatpush3.bf16.msra.mxu0 %v4852_v57 }
  0x7e   :  { %4859 = vmatpush3.bf16.msra.mxu1 %v4858_v59  ;;  %4854 = vmatprep.subr.bf16.mxu0 %v4983_v3 }
  0x7f   :  { %4860 = vmatprep.subr.bf16.mxu1 %v4983_v3  ;;  %4567 = vmatprep.mubr.msk.f32.mxu0 %vm4984_vm0, %v4985_v11 }
  0x80   :  { %4580 = vmatprep.mubr.msk.f32.mxu1 %vm4984_vm0, %v4985_v11 }
  0x81   :  { %4856 = vmatpush3.bf16.msra.mxu0 %v4855_v63 }
  0x82   :  { %4862 = vmatpush3.bf16.msra.mxu1 %v4861_v1  ;;  %4565 = vmatprep.subr.mxu0 %v4985_v11 }
  0x83   :  { %4578 = vmatprep.subr.mxu1 %v4985_v11 }
  0x85   :  { %4566 = vmatpush3.msk.msra.mxu0 %vm166_vm1, %v156_v2 }
  0x86   :  { %4579 = vmatpush3.msk.msra.mxu1 %vm166_vm1, %v161_v4  ;;  %4583 = vmatprep.subr.mxu0 %v4985_v11 }
  0x87   :  { %4588 = vmatprep.subr.mxu1 %v4985_v11  ;;  %4568 = vmatmul.mubr.msk.f32.vlgmr.msra.gmra.mrb[22].mxu0 %vm162_vm2, %v40_v5 }
  0x88   :  { %4581 = vmatmul.mubr.msk.f32.vlgmr.msra.gmra.mrb[22].mxu1 %vm162_vm2, %v41_v6  ;;  %4585 = vmatprep.mubr.msk.f32.mxu0 %vm4984_vm0, %v4985_v11 }
  0x89   :  { %4590 = vmatprep.mubr.msk.f32.mxu1 %vm4984_vm0, %v4985_v11 }
  0xe0   :  { %v236_v7 = vpop.f32.mrb[0].mxu0 }
  0xe1   :  { %v4283_v8 = vpop.f32.mrb[1].mxu0 }
  0xe2   :  { %v312_v9 = vpop.f32.mrb[0].mxu1 }
  0xe3   :  { %v4296_v10 = vpop.f32.mrb[1].mxu1 }
  0xeb   :  { %v388_v12 = vpop.f32.mrb[2].mxu0 }
  0xec   :  { %v4309_v13 = vpop.f32.mrb[3].mxu0 }
  0xed   :  { %v464_v14 = vpop.f32.mrb[2].mxu1 }
  0xee   :  { %v4322_v15 = vpop.f32.mrb[3].mxu1 }
  0xf6   :  { %v540_v16 = vpop.f32.mrb[4].mxu0 }
  0xf7   :  { %v4335_v17 = vpop.f32.mrb[5].mxu0 }
  0xf8   :  { %v616_v18 = vpop.f32.mrb[4].mxu1 }
  0xf9   :  { %v4348_v19 = vpop.f32.mrb[5].mxu1 }
 0x101   :  { %v692_v20 = vpop.f32.mrb[6].mxu0 }
 0x102   :  { %v4361_v21 = vpop.f32.mrb[7].mxu0 }
 0x103   :  { %v768_v22 = vpop.f32.mrb[6].mxu1 }
 0x104   :  { %v4374_v23 = vpop.f32.mrb[7].mxu1 }
 0x10c   :  { %v844_v24 = vpop.f32.mrb[8].mxu0 }
 0x10d   :  { %v920_v25 = vpop.f32.mrb[8].mxu1  ;;  %v4387_v26 = vpop.f32.mrb[9].mxu0  ;;  %4584 = vmatpush3.xpose.msk.msra.mxu0 %vm1988_vm3, %v844_v24 }
 0x10e   :  { %4589 = vmatpush3.xpose.msk.msra.mxu1 %vm1988_vm3, %v920_v25  ;;  %v4400_v27 = vpop.f32.mrb[9].mxu1  ;;  %4593 = vmatprep.subr.mxu0 %v4985_v11 }
 0x10f   :  { %4598 = vmatprep.subr.mxu1 %v4985_v11 }
 0x110   :  { %4586 = vmatmul.mubr.msk.f32.vlgmr.msra.gmra.mrb[24].mxu0 %vm1988_vm3, %v236_v7 }
 0x111   :  { %4591 = vmatmul.mubr.msk.f32.vlgmr.msra.gmra.mrb[24].mxu1 %vm1988_vm3, %v312_v9  ;;  %4595 = vmatprep.mubr.msk.f32.mxu0 %vm4984_vm0, %v4985_v11 }
 0x112   :  { %4600 = vmatprep.mubr.msk.f32.mxu1 %vm4984_vm0, %v4985_v11 }
 0x117   :  { %v996_v28 = vpop.f32.mrb[10].mxu0 }
 0x118   :  { %v1072_v29 = vpop.f32.mrb[10].mxu1  ;;  %v4413_v30 = vpop.f32.mrb[11].mxu0  ;;  %4594 = vmatpush3.xpose.msk.msra.mxu0 %vm1988_vm3, %v996_v28 }
 0x119   :  { %4599 = vmatpush3.xpose.msk.msra.mxu1 %vm1988_vm3, %v1072_v29  ;;  %v4426_v31 = vpop.f32.mrb[11].mxu1  ;;  %4603 = vmatprep.subr.mxu0 %v4985_v11 }
 0x11a   :  { %4608 = vmatprep.subr.mxu1 %v4985_v11 }
 0x11b   :  { %4596 = vmatmul.mubr.msk.f32.vlgmr.msra.gmra.mrb[26].mxu0 %vm1988_vm3, %v388_v12 }
 0x11c   :  { %4601 = vmatmul.mubr.msk.f32.vlgmr.msra.gmra.mrb[26].mxu1 %vm1988_vm3, %v464_v14  ;;  %4605 = vmatprep.mubr.msk.f32.mxu0 %vm4984_vm0, %v4985_v11 }
 0x11d   :  { %4610 = vmatprep.mubr.msk.f32.mxu1 %vm4984_vm0, %v4985_v11 }
 0x122   :  { %v1148_v32 = vpop.f32.mrb[12].mxu0 }
 0x123   :  { %v1224_v33 = vpop.f32.mrb[12].mxu1  ;;  %v4439_v34 = vpop.f32.mrb[13].mxu0  ;;  %4604 = vmatpush3.xpose.msk.msra.mxu0 %vm1988_vm3, %v1148_v32 }
 0x124   :  { %4609 = vmatpush3.xpose.msk.msra.mxu1 %vm1988_vm3, %v1224_v33  ;;  %v4452_v35 = vpop.f32.mrb[13].mxu1  ;;  %4613 = vmatprep.subr.mxu0 %v4985_v11 }
 0x125   :  { %4618 = vmatprep.subr.mxu1 %v4985_v11 }
 0x126   :  { %4606 = vmatmul.mubr.msk.f32.vlgmr.msra.gmra.mrb[28].mxu0 %vm1988_vm3, %v540_v16 }
 0x127   :  { %4611 = vmatmul.mubr.msk.f32.vlgmr.msra.gmra.mrb[28].mxu1 %vm1988_vm3, %v616_v18  ;;  %4615 = vmatprep.mubr.msk.f32.mxu0 %vm4984_vm0, %v4985_v11 }
 0x128   :  { %4620 = vmatprep.mubr.msk.f32.mxu1 %vm4984_vm0, %v4985_v11 }
 0x12d   :  { %v1300_v36 = vpop.f32.mrb[14].mxu0 }
 0x12e   :  { %v1376_v37 = vpop.f32.mrb[14].mxu1  ;;  %v4465_v38 = vpop.f32.mrb[15].mxu0  ;;  %4614 = vmatpush3.xpose.msk.msra.mxu0 %vm1988_vm3, %v1300_v36 }
 0x12f   :  { %4619 = vmatpush3.xpose.msk.msra.mxu1 %vm1988_vm3, %v1376_v37  ;;  %v4478_v39 = vpop.f32.mrb[15].mxu1  ;;  %4623 = vmatprep.subr.mxu0 %v4985_v11 }
 0x130   :  { %4628 = vmatprep.subr.mxu1 %v4985_v11 }
 0x131   :  { %4616 = vmatmul.mubr.msk.f32.vlgmr.msra.gmra.mrb[30].mxu0 %vm1988_vm3, %v692_v20 }
 0x132   :  { %4621 = vmatmul.mubr.msk.f32.vlgmr.msra.gmra.mrb[30].mxu1 %vm1988_vm3, %v768_v22  ;;  %4625 = vmatprep.mubr.msk.f32.mxu0 %vm4984_vm0, %v4985_v11 }
 0x133   :  { %4630 = vmatprep.mubr.msk.f32.mxu1 %vm4984_vm0, %v4985_v11 }
 0x139   :  { %v1452_v40 = vpop.f32.mrb[16].mxu0 }
 0x13a   :  { %v4491_v41 = vpop.f32.mrb[17].mxu0  ;;  %4624 = vmatpush3.msra.mxu0 %v1452_v40  ;;  %v1528_v42 = vpop.f32.mrb[16].mxu1 }
 0x13b   :  { %v4504_v43 = vpop.f32.mrb[17].mxu1  ;;  %4629 = vmatpush3.msra.mxu1 %v1528_v42  ;;  %4633 = vmatprep.subr.mxu0 %v4985_v11 }
 0x13c   :  { %4638 = vmatprep.subr.mxu1 %v4985_v11 }
 0x144   :  { %v5664_v44 = vpop.f32.mrb[18].mxu0 }
 0x145   :  { %v4517_v45 = vpop.f32.mrb[19].mxu0  ;;  %v5666_v46 = vpop.f32.mrb[18].mxu1 }
 0x146   :  { %v4530_v47 = vpop.f32.mrb[19].mxu1 }
 0x14f   :  { %v5668_v48 = vpop.f32.mrb[20].mxu0 }
 0x150   :  { %v5670_v49 = vpop.f32.mrb[20].mxu1  ;;  %v4543_v50 = vpop.f32.mrb[21].mxu0 }
 0x151   :  { %v4556_v51 = vpop.f32.mrb[21].mxu1 }
 0x15a   :  { %v5672_v52 = vpop.f32.mrb[22].mxu0 }
 0x15b   :  { %v5674_v53 = vpop.f32.mrb[22].mxu1  ;;  %v4569_v54 = vpop.f32.mrb[23].mxu0 }
 0x15c   :  { %v4582_v55 = vpop.f32.mrb[23].mxu1 }
 0x1e3   :  { %v2061_v56 = vpop.f32.mrb[24].mxu0 }
 0x1e4   :  { %v2597_v57 = vmul.f32 0.35355338, %v2061_v56  ;;  %v2137_v58 = vpop.f32.mrb[24].mxu1  ;;  %v4587_v59 = vpop.f32.mrb[25].mxu0 }
 0x1e5   :  { %v4592_v60 = vpop.f32.mrb[25].mxu1  ;;  %v2598_v61 = vmul.f32 0.35355338, %v2137_v58 }
 0x1e6   :  { %v2606_v62 = vsel %vm2605_vm4, %v2597_v57, -inf }
 0x1e7   :  { %2607 = vmax.xlane.f32.xlu0 %v2606_v62  ;;  %v2609_v63 = vsel %vm2605_vm4, %v2598_v61, -inf }
 0x1eb   :  { %2610 = vmax.xlane.f32.xlu0 %v2609_v63 }
 0x1ee   :  { %v2213_v0 = vpop.f32.mrb[26].mxu0 }
 0x1ef   :  { %v2599_v1 = vmul.f32 0.35355338, %v2213_v0  ;;  %v2289_v2 = vpop.f32.mrb[26].mxu1  ;;  %v4597_v4 = vpop.f32.mrb[27].mxu0 }
 0x1f0   :  { %v4602_v5 = vpop.f32.mrb[27].mxu1  ;;  %v2600_v6 = vmul.f32 0.35355338, %v2289_v2 }
 0x1f1   :  { %v2612_v7 = vsel %vm2605_vm4, %v2599_v1, -inf }
 0x1f2   :  { %2613 = vmax.xlane.f32.xlu1 %v2612_v7  ;;  %v2615_v8 = vsel %vm2605_vm4, %v2600_v6, -inf }
 0x1f6   :  { %2616 = vmax.xlane.f32.xlu1 %v2615_v8 }
 0x1f9   :  { %v2365_v9 = vpop.f32.mrb[28].mxu0 }
 0x1fa   :  { %v2601_v10 = vmul.f32 0.35355338, %v2365_v9  ;;  %v2441_v12 = vpop.f32.mrb[28].mxu1  ;;  %v4607_v13 = vpop.f32.mrb[29].mxu0 }
 0x1fb   :  { %v2602_v14 = vmul.f32 0.35355338, %v2441_v12  ;;  %v4612_v15 = vpop.f32.mrb[29].mxu1 }
 0x1fc   :  { %v2618_v16 = vsel %vm2605_vm4, %v2601_v10, -inf }
 0x1fd   :  { %v2621_v17 = vsel %vm2605_vm4, %v2602_v14, -inf  ;;  %2619 = vmax.xlane.f32.xlu0 %v2618_v16 }
 0x1fe   :  { %2622 = vmax.xlane.f32.xlu1 %v2621_v17 }
 0x204   :  { %v2517_v18 = vpop.f32.mrb[30].mxu0 }
 0x205   :  { %v2603_v19 = vmul.f32 0.35355338, %v2517_v18  ;;  %v2593_v20 = vpop.f32.mrb[30].mxu1  ;;  %v4617_v21 = vpop.f32.mrb[31].mxu0 }
 0x206   :  { %v2604_v22 = vmul.f32 0.35355338, %v2593_v20  ;;  %v4622_v23 = vpop.f32.mrb[31].mxu1 }
 0x207   :  { %v2624_v24 = vsel %vm2605_vm4, %v2603_v19, -inf }
 0x208   :  { %v2627_v25 = vsel %vm2605_vm4, %v2604_v22, -inf  ;;  %2625 = vmax.xlane.f32.xlu0 %v2624_v24 }
 0x209   :  { %2628 = vmax.xlane.f32.xlu1 %v2627_v25 }
 0x274   :  { %v2608_v26 = vpop.xlane.xlu0 %2607 }
 0x275   :  { %v2630_v27 = vsub.f32 %v2597_v57, %v2608_v26 }
 0x277   :  { %v2638_v28 = vmul.f32 1.442695, %v2630_v27 }
 0x278   :  { %v2611_v29 = vpop.xlane.xlu0 %2610 }
 0x279   :  { %4903 = vpow2.f32 %v2638_v28  ;;  %v2631_v30 = vsub.f32 %v2598_v61, %v2611_v29 }
 0x27b   :  { %v2640_v31 = vmul.f32 1.442695, %v2631_v30 }
 0x27d   :  { %4905 = vpow2.f32 %v2640_v31 }
 0x27f   :  { %v2614_v32 = vpop.xlane.xlu1 %2613 }
 0x280   :  { %v2632_v33 = vsub.f32 %v2599_v1, %v2614_v32 }
 0x282   :  { %v2642_v34 = vmul.f32 1.442695, %v2632_v33 }
 0x283   :  { %v4904_v35 = vpop.eup %4903  ;;  %v2617_v36 = vpop.xlane.xlu1 %2616 }
 0x284   :  { %4907 = vpow2.f32 %v2642_v34  ;;  %v2633_v37 = vsub.f32 %v2600_v6, %v2617_v36  ;;  %v2654_v38 = vsel %vm2605_vm4, %v4904_v35, 0.0 }
 0x285   :  { %2655 = vadd.xlane.f32.xlu0 %v2654_v38 }
 0x286   :  { %v2644_v39 = vmul.f32 1.442695, %v2633_v37 }
 0x287   :  { %v4906_v40 = vpop.eup %4905 }
 0x288   :  { %4909 = vpow2.f32 %v2644_v39  ;;  %v2657_v41 = vsel %vm2605_vm4, %v4906_v40, 0.0 }
 0x289   :  { %2658 = vadd.xlane.f32.xlu1 %v2657_v41 }
 0x28a   :  { %v2620_v42 = vpop.xlane.xlu0 %2619 }
 0x28b   :  { %v2623_v43 = vpop.xlane.xlu1 %2622  ;;  %v2634_v45 = vsub.f32 %v2601_v10, %v2620_v42 }
 0x28c   :  { %v2635_v47 = vsub.f32 %v2602_v14, %v2623_v43 }
 0x28d   :  { %v2646_v50 = vmul.f32 1.442695, %v2634_v45 }
 0x28e   :  { %v5686_v51 = vpop.eup %4907  ;;  %v2648_v54 = vmul.f32 1.442695, %v2635_v47 }
 0x28f   :  { %4911 = vpow2.f32 %v2646_v50  ;;  %v2660_v55 = vsel %vm2605_vm4, %v5686_v51, 0.0 }
 0x290   :  { %4913 = vpow2.f32 %v2648_v54  ;;  %2661 = vadd.xlane.f32.xlu0 %v2660_v55 }
 0x292   :  { %v5690_v56 = vpop.eup %4909 }
 0x293   :  { %v2663_v57 = vsel %vm2605_vm4, %v5690_v56, 0.0 }
 0x294   :  { %2664 = vadd.xlane.f32.xlu1 %v2663_v57 }
 0x295   :  { %v2626_v58 = vpop.xlane.xlu0 %2625 }
 0x296   :  { %v2629_v59 = vpop.xlane.xlu1 %2628  ;;  %v2636_v60 = vsub.f32 %v2603_v19, %v2626_v58 }
 0x297   :  { %v2637_v61 = vsub.f32 %v2604_v22, %v2629_v59 }
 0x298   :  { %v2650_v62 = vmul.f32 1.442695, %v2636_v60 }
 0x299   :  { %v5694_v63 = vpop.eup %4911  ;;  %v2652_v0 = vmul.f32 1.442695, %v2637_v61 }
 0x29a   :  { %v5696_v1 = vpop.eup %4913  ;;  %4915 = vpow2.f32 %v2650_v62  ;;  %v2666_v2 = vsel %vm2605_vm4, %v5694_v63, 0.0  ;;  %v3312_v62 = vld [vmem:[%s5897_s2 + $0x10] sm:$0xff] }
 0x29b   :  { %4917 = vpow2.f32 %v2652_v0  ;;  %v2669_v4 = vsel %vm2605_vm4, %v5696_v1, 0.0  ;;  %2667 = vadd.xlane.f32.xlu0 %v2666_v2  ;;  %v3315_v2 = vld [vmem:[%s5897_s2 + $0x28] sm:$0x1] }
 0x29c   :  { %2670 = vadd.xlane.f32.xlu1 %v2669_v4 }
 0x2a4   :  { %v5702_v5 = vpop.eup %4915 }
 0x2a5   :  { %v5704_v6 = vpop.eup %4917  ;;  %v2672_v7 = vsel %vm2605_vm4, %v5702_v5, 0.0 }
 0x2a6   :  { %v2675_v8 = vsel %vm2605_vm4, %v5704_v6, 0.0  ;;  %2673 = vadd.xlane.f32.xlu0 %v2672_v7 }
 0x2a7   :  { %2676 = vadd.xlane.f32.xlu1 %v2675_v8 }
 0x312   :  { %v2656_v9 = vpop.xlane.xlu0 %2655 }
 0x313   :  { %4919 = vrcp.f32 %v2656_v9 }
 0x316   :  { %v2659_v10 = vpop.xlane.xlu1 %2658 }
 0x317   :  { %4921 = vrcp.f32 %v2659_v10 }
 0x31d   :  { %v4920_v12 = vpop.eup %4919  ;;  %v2662_v13 = vpop.xlane.xlu0 %2661 }
 0x31e   :  { %v2686_v14 = vmul.f32 %v4920_v12, %v2656_v9  ;;  %4923 = vrcp.f32 %v2662_v13 }
 0x320   :  { %v2694_v15 = vsub.f32 2.0, %v2686_v14  ;;  %v3319_v14 = vld [vmem:[%s5897_s2 + $0x48] sm:$0x1] }
 0x321   :  { %v4922_v16 = vpop.eup %4921  ;;  %v2665_v17 = vpop.xlane.xlu1 %2664 }
 0x322   :  { %v2702_v18 = vmul.f32 %v4920_v12, %v2694_v15  ;;  %v2687_v19 = vmul.f32 %v4922_v16, %v2659_v10  ;;  %4925 = vrcp.f32 %v2665_v17 }
 0x324   :  { %v2710_v20 = vmul.f32 %v4904_v35, %v2702_v18  ;;  %v2695_v21 = vsub.f32 2.0, %v2687_v19 }
 0x326   :  { %2718 = vst.msk [vmem:[#allocation4] sm:$0xff] %vm2605_vm4, %v2710_v20  ;;  %v2703_v22 = vmul.f32 %v4922_v16, %v2695_v21  ;;  %4626 = vmatmul.mubr.msk.f32.vlgmr.msra.gmra.mrb[32].mxu0 %vm2605_vm4, %v2710_v20  ;;  %v3320_v16 = vld [vmem:[%s5897_s2 + $0x50] sm:$0xff] }
 0x327   :  { %4634 = vmatpush3.msra.mxu0 %v5664_v44  ;;  %4635 = vmatprep.mubr.msk.f32.mxu0 %vm4984_vm0, %v4985_v11 }
 0x328   :  { %v4924_v23 = vpop.eup %4923  ;;  %v2711_v24 = vmul.f32 %v4906_v40, %v2703_v22  ;;  %v2668_v25 = vpop.xlane.xlu0 %2667  ;;  %4643 = vmatprep.subr.mxu0 %v4985_v11 }
 0x329   :  { %v2688_v26 = vmul.f32 %v4924_v23, %v2662_v13  ;;  %v2671_v27 = vpop.xlane.xlu1 %2670  ;;  %4927 = vrcp.f32 %v2668_v25  ;;  %v3318_v13 = vld [vmem:[%s5897_s2 + $0x40] sm:$0xff] }
 0x32a   :  { %2719 = vst.msk [vmem:[#allocation4 + $0x8] sm:$0xff] %vm2605_vm4, %v2711_v24  ;;  %4929 = vrcp.f32 %v2671_v27  ;;  %4631 = vmatmul.mubr.msk.f32.vlgmr.msra.gmra.mrb[32].mxu1 %vm2605_vm4, %v2711_v24  ;;  %v4880_v15 = vpack.c.bf16 %v3319_v14, %v3318_v13  ;;  %v3323_v24 = vld [vmem:[%s5897_s2 + $0x68] sm:$0x1] }
 0x32b   :  { %v2696_v28 = vsub.f32 2.0, %v2688_v26  ;;  %4639 = vmatpush3.msra.mxu1 %v5666_v46  ;;  %4640 = vmatprep.mubr.msk.f32.mxu1 %vm4984_vm0, %v4985_v11  ;;  %v3325_v26 = vld [vmem:[%s5897_s2 + $0x78] sm:$0x1] }
 0x32c   :  { %v4926_v44 = vpop.eup %4925  ;;  %4648 = vmatprep.subr.mxu1 %v4985_v11 }
 0x32d   :  { %v2704_v29 = vmul.f32 %v4924_v23, %v2696_v28  ;;  %v2689_v30 = vmul.f32 %v4926_v44, %v2665_v17  ;;  %v3321_v17 = vld [vmem:[%s5897_s2 + $0x58] sm:$0x1]  ;;  %v3322_v23 = vld [vmem:[%s5897_s2 + $0x60] sm:$0xff] }
 0x32e   :  { %v4884_v20 = vpack.c.bf16 %v3321_v17, %v3320_v16 }
 0x32f   :  { %v2712_v31 = vmul.f32 %v5686_v51, %v2704_v29  ;;  %v2697_v32 = vsub.f32 2.0, %v2689_v30 }
 0x331   :  { %2720 = vst.msk [vmem:[#allocation4 + $0x10] sm:$0xff] %vm2605_vm4, %v2712_v31  ;;  %v2705_v33 = vmul.f32 %v4926_v44, %v2697_v32  ;;  %4636 = vmatmul.mubr.msk.f32.vlgmr.msra.gmra.mrb[34].mxu0 %vm2605_vm4, %v2712_v31 }
 0x332   :  { %4644 = vmatpush3.msra.mxu0 %v5668_v48  ;;  %4645 = vmatprep.mubr.msk.f32.mxu0 %vm4984_vm0, %v4985_v11 }
 0x333   :  { %v4928_v46 = vpop.eup %4927  ;;  %v2713_v34 = vmul.f32 %v5690_v56, %v2705_v33  ;;  %v2674_v35 = vpop.xlane.xlu0 %2673  ;;  %4653 = vmatprep.subr.mxu0 %v4985_v11 }
 0x334   :  { %v4930_v36 = vpop.eup %4929  ;;  %v2690_v37 = vmul.f32 %v4928_v46, %v2668_v25  ;;  %v2677_v38 = vpop.xlane.xlu1 %2676  ;;  %4931 = vrcp.f32 %v2674_v35  ;;  %v3324_v25 = vld [vmem:[%s5897_s2 + $0x70] sm:$0xff] }
 0x335   :  { %2721 = vst.msk [vmem:[#allocation4 + $0x18] sm:$0xff] %vm2605_vm4, %v2713_v34  ;;  %v2691_v39 = vmul.f32 %v4930_v36, %v2671_v27  ;;  %4933 = vrcp.f32 %v2677_v38  ;;  %4641 = vmatmul.mubr.msk.f32.vlgmr.msra.gmra.mrb[34].mxu1 %vm2605_vm4, %v2713_v34  ;;  %v4888_v27 = vpack.c.bf16 %v3323_v24, %v3322_v23  ;;  %v4892_v28 = vpack.c.bf16 %v3325_v26, %v3324_v25 }
 0x336   :  { %v2698_v48 = vsub.f32 2.0, %v2690_v37  ;;  %4649 = vmatpush3.msra.mxu1 %v5670_v49  ;;  %4650 = vmatprep.mubr.msk.f32.mxu1 %vm4984_vm0, %v4985_v11 }
 0x337   :  { %v2699_v40 = vsub.f32 2.0, %v2691_v39  ;;  %4658 = vmatprep.subr.mxu1 %v4985_v11 }
 0x338   :  { %v2706_v41 = vmul.f32 %v4928_v46, %v2698_v48 }
 0x339   :  { %v2707_v42 = vmul.f32 %v4930_v36, %v2699_v40 }
 0x33a   :  { %v2714_v43 = vmul.f32 %v5694_v63, %v2706_v41  ;;  %v3313_v63 = vld [vmem:[%s5897_s2 + $0x18] sm:$0x1] }
 0x33b   :  { %v2715_v45 = vmul.f32 %v5696_v1, %v2707_v42  ;;  %v4868_v0 = vpack.c.bf16 %v3313_v63, %v3312_v62  ;;  %v3314_v1 = vld [vmem:[%s5897_s2 + $0x20] sm:$0xff] }
 0x33c   :  { %2722 = vst.msk [vmem:[#allocation4 + $0x20] sm:$0xff] %vm2605_vm4, %v2714_v43  ;;  %4646 = vmatmul.mubr.msk.f32.vlgmr.msra.gmra.mrb[36].mxu0 %vm2605_vm4, %v2714_v43  ;;  %v4872_v4 = vpack.c.bf16 %v3315_v2, %v3314_v1 }
 0x33d   :  { %2723 = vst.msk [vmem:[#allocation4 + $0x28] sm:$0xff] %vm2605_vm4, %v2715_v45  ;;  %4651 = vmatmul.mubr.msk.f32.vlgmr.msra.gmra.mrb[36].mxu1 %vm2605_vm4, %v2715_v45  ;;  %4654 = vmatpush3.msra.mxu0 %v5672_v52  ;;  %v3310_v52 = vld [vmem:[%s5897_s2] sm:$0xff] }
 0x33e   :  { %v4932_v49 = vpop.eup %4931  ;;  %4659 = vmatpush3.msra.mxu1 %v5674_v53  ;;  %4655 = vmatprep.mubr.msk.f32.mxu0 %vm4984_vm0, %v4985_v11  ;;  %v3311_v53 = vld [vmem:[%s5897_s2 + $0x8] sm:$0x1] }
 0x33f   :  { %v4934_v47 = vpop.eup %4933  ;;  %v2692_v50 = vmul.f32 %v4932_v49, %v2674_v35  ;;  %4660 = vmatprep.mubr.msk.f32.mxu1 %vm4984_vm0, %v4985_v11  ;;  %4863 = vmatprep.subr.bf16.mxu0 %v4983_v3  ;;  %v4864_v58 = vpack.c.bf16 %v3311_v53, %v3310_v52 }
 0x340   :  { %v2693_v51 = vmul.f32 %v4934_v47, %v2677_v38  ;;  %4867 = vmatprep.subr.bf16.mxu1 %v4983_v3 }
 0x341   :  { %v2700_v54 = vsub.f32 2.0, %v2692_v50 }
 0x342   :  { %v2701_v55 = vsub.f32 2.0, %v2693_v51 }
 0x343   :  { %v2708_v56 = vmul.f32 %v4932_v49, %v2700_v54 }
 0x344   :  { %v2709_v57 = vmul.f32 %v4934_v47, %v2701_v55 }
 0x345   :  { %v2716_v59 = vmul.f32 %v5702_v5, %v2708_v56  ;;  %v3316_v5 = vld [vmem:[%s5897_s2 + $0x30] sm:$0xff] }
 0x346   :  { %v2717_v61 = vmul.f32 %v5704_v6, %v2709_v57  ;;  %v3317_v6 = vld [vmem:[%s5897_s2 + $0x38] sm:$0x1]  ;;  %s4987_s2 = smov [#allocation4]  }
 0x347   :  { %2724 = vst.msk [vmem:[#allocation4 + $0x30] sm:$0xff] %vm2605_vm4, %v2716_v59  ;;  %4656 = vmatmul.mubr.msk.f32.vlgmr.msra.gmra.mrb[38].mxu0 %vm2605_vm4, %v2716_v59  ;;  %v4876_v9 = vpack.c.bf16 %v3317_v6, %v3316_v5  ;;  %s3968_s19 = sshll.u32 %s4987_s2, 4  ;;  %s3969_s19 = int_to_ptr.vmem [resolvable:$true] %s3968_s19 }
 0x348   :  { %2725 = vst.msk [vmem:[#allocation4 + $0x38] sm:$0xff] %vm2605_vm4, %v2717_v61  ;;  %4661 = vmatmul.mubr.msk.f32.vlgmr.msra.gmra.mrb[38].mxu1 %vm2605_vm4, %v2717_v61  ;;  %4866 = vmatpush3.bf16.msk.msra.mxu0 %vm5758_vm6, %v4864_v58  ;;  %s4935_s20 = scalar_lea.vmem %s3969_s19, 1024  ;;  %p4940_p1 = scmp.lt.s32.totalorder %s3969_s19, %s3969_s19 }
 0x349   :  { %4667 = vmatprep.mubr.msk.f32.mxu0 %vm4984_vm0, %v4985_v11  ;;  %4674 = vmatprep.mubr.msk.f32.mxu1 %vm4984_vm0, %v4985_v11  ;;  %p4936_p0 = scmp.ne.s32.totalorder %s3969_s19, %s4935_s20  ;;  %p4941_p2 = scmp.lt.s32.totalorder %s4935_s20, %s4935_s20 }
 0x34a   :  { %4871 = vmatprep.subr.bf16.mxu0 %v4983_v3  ;;  %4870 = vmatpush3.bf16.msk.msra.mxu1 %vm5758_vm6, %v4868_v0 }
 0x34b   :  { %4875 = vmatprep.subr.bf16.mxu1 %v4983_v3  ;;  %p4942_p3 = por %p4941_p2, %p4940_p1 }
 0x34d   :  { %p4943_p4 = pnand %p4942_p3, %p4936_p0 }
 0x3f9   :  { %v2795_v7 = vpop.f32.mrb[32].mxu0 }
 0x3fa   :  { %v4627_v8 = vpop.f32.mrb[33].mxu0  ;;  %4668 = vmatmul.mubr.msk.f32.vlgmr.msra.gmra.mrb[40].mxu0 %vm1988_vm3, %v2795_v7 }
 0x3fb   :  { %4874 = vmatpush3.bf16.msk.msra.mxu0 %vm5758_vm6, %v4872_v4  ;;  %4681 = vmatprep.mubr.msk.f32.mxu0 %vm4984_vm0, %v4985_v11 }
 0x3fc   :  { %4879 = vmatprep.subr.bf16.mxu0 %v4983_v3 }
 0x3fd   :  { %v2868_v10 = vpop.f32.mrb[32].mxu1 }
 0x3fe   :  { %v4632_v12 = vpop.f32.mrb[33].mxu1  ;;  %4675 = vmatmul.mubr.msk.f32.vlgmr.msra.gmra.mrb[40].mxu1 %vm1988_vm3, %v2868_v10 }
 0x3ff   :  { %4878 = vmatpush3.bf16.msk.msra.mxu1 %vm5758_vm6, %v4876_v9  ;;  %4688 = vmatprep.mubr.msk.f32.mxu1 %vm4984_vm0, %v4985_v11 }
 0x400   :  { %4883 = vmatprep.subr.bf16.mxu1 %v4983_v3 }
 0x404   :  { %v2941_v18 = vpop.f32.mrb[34].mxu0 }
 0x405   :  { %v4637_v19 = vpop.f32.mrb[35].mxu0  ;;  %4682 = vmatmul.mubr.msk.f32.vlgmr.msra.gmra.mrb[42].mxu0 %vm1988_vm3, %v2941_v18 }
 0x406   :  { %4882 = vmatpush3.bf16.msk.msra.mxu0 %vm5758_vm6, %v4880_v15  ;;  %4695 = vmatprep.mubr.msk.f32.mxu0 %vm4984_vm0, %v4985_v11 }
 0x407   :  { %4887 = vmatprep.subr.bf16.mxu0 %v4983_v3 }
 0x408   :  { %v3014_v21 = vpop.f32.mrb[34].mxu1 }
 0x409   :  { %v4642_v22 = vpop.f32.mrb[35].mxu1  ;;  %4689 = vmatmul.mubr.msk.f32.vlgmr.msra.gmra.mrb[42].mxu1 %vm1988_vm3, %v3014_v21 }
 0x40a   :  { %4886 = vmatpush3.bf16.msk.msra.mxu1 %vm5758_vm6, %v4884_v20  ;;  %4702 = vmatprep.mubr.msk.f32.mxu1 %vm4984_vm0, %v4985_v11 }
 0x40b   :  { %4891 = vmatprep.subr.bf16.mxu1 %v4983_v3 }
 0x40f   :  { %v3087_v44 = vpop.f32.mrb[36].mxu0 }
 0x410   :  { %v3160_v29 = vpop.f32.mrb[36].mxu1  ;;  %v4647_v30 = vpop.f32.mrb[37].mxu0  ;;  %4696 = vmatmul.mubr.msk.f32.vlgmr.msra.gmra.mrb[44].mxu0 %vm1988_vm3, %v3087_v44 }
 0x411   :  { %v4652_v31 = vpop.f32.mrb[37].mxu1  ;;  %4703 = vmatmul.mubr.msk.f32.vlgmr.msra.gmra.mrb[44].mxu1 %vm1988_vm3, %v3160_v29  ;;  %4890 = vmatpush3.bf16.msk.msra.mxu0 %vm5758_vm6, %v4888_v27 }
 0x412   :  { %4894 = vmatpush3.bf16.msk.msra.mxu1 %vm5758_vm6, %v4892_v28  ;;  %4709 = vmatprep.mubr.msk.f32.mxu0 %vm4984_vm0, %v4985_v11 }
 0x413   :  { %4716 = vmatprep.mubr.msk.f32.mxu1 %vm4984_vm0, %v4985_v11 }
 0x41a   :  { %v3233_v3 = vpop.f32.mrb[38].mxu0 }
 0x41b   :  { %v3306_v32 = vpop.f32.mrb[38].mxu1  ;;  %v4657_v33 = vpop.f32.mrb[39].mxu0  ;;  %4710 = vmatmul.mubr.msk.f32.vlgmr.msra.gmra.mrb[46].mxu0 %vm1988_vm3, %v3233_v3 }
 0x41c   :  { %v4662_v46 = vpop.f32.mrb[39].mxu1  ;;  %4717 = vmatmul.mubr.msk.f32.vlgmr.msra.gmra.mrb[46].mxu1 %vm1988_vm3, %v3306_v32 }
 0x41d   :  { %4946 = shalt.err (!%p4943_p4)
}
 0x41e   :  { %s4947_s23 = scalar_lea.hbm %s5899_s4, 1024 }
 0x41f   :  { %p4948_p5 = scmp.ne.s32.totalorder %s5899_s4, %s4947_s23  ;;  %p4951_p6 = scmp.lt.u32.totalorder %s4947_s23, %s5899_s4 }
 0x421   :  { %p4953_p7 = pnand %p4951_p6, %p4948_p5 }
 0x423   :  { %4956 = shalt.err (!%p4953_p7)
}
 0x424   :  { %s4988_s28 = smov 128   ;;  %s4989_s29 = smov 8   ;;  %vm3934_vm7 = vcmask 261120  }
 0x425   :  { %3974 = dma.vmem_to_hbm [thread:$0]  %s3969_s19, 1024, %s5899_s4, [#allocation5], %s4988_s28, %s4988_s28, %s4989_s29  }
 0x426   :  { %s4990_s4 = smov [#allocation2]  }
 0x427   :  { %s3956_s6 = sshll.u32 %s4990_s4, 4  ;;  %s3957_s6 = int_to_ptr.vmem [resolvable:$true] %s3956_s6 }
 0x428   :  { %s4957_s7 = scalar_lea.vmem %s3957_s6, 256  ;;  %p4962_p9 = scmp.lt.s32.totalorder %s3957_s6, %s3957_s6 }
 0x429   :  { %p4958_p8 = scmp.ne.s32.totalorder %s3957_s6, %s4957_s7  ;;  %p4963_p10 = scmp.lt.s32.totalorder %s4957_s7, %s4957_s7 }
 0x42b   :  { %p4964_p11 = por %p4963_p10, %p4962_p9 }
 0x42d   :  { %p4965_p12 = pnand %p4964_p11, %p4958_p8 }
 0x4cd   :  { %v3398_v11 = vpop.f32.mrb[40].mxu0 }
 0x4ce   :  { %v4669_v34 = vpop.f32.mrb[41].mxu0  ;;  %v3935_v36 = vsel %vm3934_vm7, %v3398_v11, 0.0 }
 0x4d1   :  { %v3474_v35 = vpop.f32.mrb[40].mxu1 }
 0x4d2   :  { %v3936_v37 = vsel %vm3934_vm7, %v3474_v35, 0.0  ;;  %v4676_v38 = vpop.f32.mrb[41].mxu1 }
 0x4d3   :  { %v3937_v39 = vadd.f32 %v3936_v37, %v3935_v36 }
 0x4d8   :  { %v3550_v48 = vpop.f32.mrb[42].mxu0 }
 0x4d9   :  { %v3938_v40 = vsel %vm3934_vm7, %v3550_v48, 0.0  ;;  %v4683_v41 = vpop.f32.mrb[43].mxu0 }
 0x4da   :  { %v3939_v42 = vadd.f32 %v3938_v40, %v3937_v39 }
 0x4dc   :  { %v3626_v43 = vpop.f32.mrb[42].mxu1 }
 0x4dd   :  { %v3940_v45 = vsel %vm3934_vm7, %v3626_v43, 0.0  ;;  %v4690_v49 = vpop.f32.mrb[43].mxu1 }
 0x4de   :  { %v3941_v47 = vadd.f32 %v3940_v45, %v3939_v42 }
 0x4e0   :  { %3949 = vst.msk [vmem:[#allocation2] sm:$0xff] %vm3934_vm7, %v3941_v47 }
 0x4e3   :  { %v3702_v50 = vpop.f32.mrb[44].mxu0 }
 0x4e4   :  { %v3942_v51 = vsel %vm3934_vm7, %v3702_v50, 0.0  ;;  %v3778_v54 = vpop.f32.mrb[44].mxu1  ;;  %v4697_v52 = vpop.f32.mrb[45].mxu0 }
 0x4e5   :  { %v3943_v53 = vsel %vm3934_vm7, %v3778_v54, 0.0  ;;  %v4704_v55 = vpop.f32.mrb[45].mxu1 }
 0x4e6   :  { %v3944_v56 = vadd.f32 %v3943_v53, %v3942_v51 }
 0x4ee   :  { %v3854_v57 = vpop.f32.mrb[46].mxu0 }
 0x4ef   :  { %v3945_v58 = vsel %vm3934_vm7, %v3854_v57, 0.0  ;;  %v3930_v59 = vpop.f32.mrb[46].mxu1  ;;  %v4711_v60 = vpop.f32.mrb[47].mxu0 }
 0x4f0   :  { %v3946_v61 = vadd.f32 %v3945_v58, %v3944_v56  ;;  %v4718_v62 = vpop.f32.mrb[47].mxu1  ;;  %v3947_v63 = vsel %vm3934_vm7, %v3930_v59, 0.0 }
 0x4f2   :  { %v3948_v0 = vadd.f32 %v3947_v63, %v3946_v61 }
 0x4f4   :  { %3950 = vst.msk [vmem:[#allocation2 + $0x8] sm:$0xff] %vm3934_vm7, %v3948_v0 }
 0x4f5   :  { %4968 = shalt.err (!%p4965_p12)
}
 0x4f6   :  { %s4969_s10 = scalar_lea.hbm %s5898_s3, 256 }
 0x4f7   :  { %p4970_p13 = scmp.ne.s32.totalorder %s5898_s3, %s4969_s10  ;;  %p4973_p0 = scmp.lt.u32.totalorder %s4969_s10, %s5898_s3 }
 0x4f9   :  { %p4975_p1 = pnand %p4973_p0, %p4970_p13 }
 0x4fb   :  { %4978 = shalt.err (!%p4975_p1)
}
 0x4fc   :  { %3962 = dma.vmem_to_hbm [thread:$0]  %s3957_s6, 256, %s5898_s3, [#allocation3], %s4988_s28, %s4988_s28, %s4989_s29  }
 0x4fd   :  { %4979 = dma.done.wait [#allocation3], 256  }
 0x4fe   :  { %4980 = vsyncadd [#allocation3], 4294967040 }
 0x4ff   :  { %4981 = dma.done.wait [#allocation5], 1024  }
 0x500   :  { %4982 = vsyncadd [#allocation5], 4294966272 }
 0x501   :  { %3981 = vsyncpa [#allocation3], 1 }
 0x502   :  { %3982 = vsyncpa [#allocation5], 1 }

</bundles_post_ra>
